<compile_context>
chip_gen: v6e
topology: v6e:2x2x1
jax: 0.10.0
libtpu: 0.0.40
codegen_flags: <defaults>
</compile_context>

<pallas_src>
import jax
import jax.numpy as jnp
from jax.experimental import pallas as pl
from jax.experimental.pallas import tpu as pltpu


def _cdiv(a, b):
    return -(-a // b)


def _round_up(x, m):
    return _cdiv(x, m) * m


# ---------------------------------------------------------------------------
# Kernel
# ---------------------------------------------------------------------------
def ranknet_kernel(xt_ref, w1_ref, b1_ref, w2_ref, b2_ref, wl_ref, bl_ref, o_ref):
    """One lane-dense row tile of the fused RankNet MLP (feature-major layout).

    xt_ref : (input_dim, TM) bf16  -- TM documents along lanes
    w1/w2  : (out, in)       bf16  -- torch nn.Linear layout, VMEM-resident
    b1/b2  : (out, 1)        f32
    wl_ref : (h1, 1)         f32   -- scoring-head weight (column vector)
    bl_ref : (1, 1)          f32
    o_ref  : (1, TM)         f32   -- lane-dense scores for this row tile
    """
    x = xt_ref[...]

    # hidden layer 0: (h0, in) @ (in, TM) -> (h0, TM); MXU, f32 accumulation
    h = jnp.dot(w1_ref[...], x, preferred_element_type=jnp.float32) + b1_ref[...]
    h = jnp.maximum(h, 0.0)

    # hidden layer 1
    h = jnp.dot(w2_ref[...], h.astype(w2_ref.dtype),
                preferred_element_type=jnp.float32) + b2_ref[...]
    h = jnp.maximum(h, 0.0)

    # scoring head on VPU/XLU (broadcast-mul + sublane reduce), not a 3rd MXU
    # matmul: sum_k wl[k] * h[k, :]  -> (1, TM)
    o_ref[...] = (jnp.sum(wl_ref[...] * h, axis=0, keepdims=True) + bl_ref[...])


# ---------------------------------------------------------------------------
# Wrappers
# ---------------------------------------------------------------------------
def _prep_params(params, operand_dtype):
    """torch-layout params -> kernel operand layout/dtypes."""
    w1, b1, w2, b2, wl, bl = params
    return (
        w1.astype(operand_dtype),                       # (h0, in)  bf16 MXU
        b1.reshape(-1, 1).astype(jnp.float32),          # (h0, 1)
        w2.astype(operand_dtype),                       # (h1, h0)  bf16 MXU
        b2.reshape(-1, 1).astype(jnp.float32),          # (h1, 1)
        wl.reshape(-1, 1).astype(jnp.float32),          # (h1, 1)   f32 VPU head
        bl.reshape(1, 1).astype(jnp.float32),           # (1, 1)
    )


def _ranknet_pallas(xt, prepped, tm):
    """xt: (input_dim, n_pad) operand-dtype, n_pad % tm == 0. Returns (1, n_pad) f32."""
    input_dim, n_pad = xt.shape
    grid = (n_pad // tm,)

    def resident(a):
        # Full-array block, constant index_map -> fetched once, VMEM-resident
        # across all grid steps (no per-step weight DMA).
        return pl.BlockSpec(a.shape, lambda i: (0, 0))

    return pl.pallas_call(
        ranknet_kernel,
        out_shape=jax.ShapeDtypeStruct((1, n_pad), jnp.float32),
        grid=grid,
        in_specs=[pl.BlockSpec((input_dim, tm), lambda i: (0, i))]
                 + [resident(a) for a in prepped],
        out_specs=pl.BlockSpec((1, tm), lambda i: (0, i)),
        compiler_params=pltpu.CompilerParams(
            # Row tiles are independent: shards across both v7x TensorCores;
            # neutral on v5e/v6e.
            dimension_semantics=("parallel",),
            # Per-step footprint (resident weights + double-buffered bf16 x
            # tile + (1, TM) f32 output) is ~5 MiB even at TM=32768 -- well
            # inside every generation's scoped-VMEM ceiling (incl. v7x).
            vmem_limit_bytes=32 * 1024 * 1024,
        ),
    )(xt, *prepped)


def _choose_tiles(n, tile_rows, min_tiles_large=4):
    """Balanced tile size: multiple of 128, <= ~tile_rows, padding <128 docs/tile.
    For large N, force >= min_tiles_large grid steps (v7x: 2 TCs x >=2 steps)."""
    assert tile_rows % 128 == 0, "tile_rows must be a multiple of 128"
    n = max(n, 1)
    n_tiles = _cdiv(n, tile_rows)
    if n >= min_tiles_large * 128:
        n_tiles = max(n_tiles, min_tiles_large)
    tm = _round_up(_cdiv(n, n_tiles), 128)
    n_pad = _round_up(n, tm)
    return tm, n_pad


def ranknet_forward(x, params, *, tile_rows=8192, operand_dtype=jnp.bfloat16):
    """x: (N, input_dim) f32, torch layout.  params: (W(out,in), b(out,)) x 3.

    Returns (N, 1) f32 scores, matching RankNet.forward in eval mode.

    Note: this entry point performs one layout-plumbing pass over x (transpose
    + cast + pad).  Callers that can produce feature-major bf16 upstream should
    use ranknet_forward_feature_major() and skip that HBM pass.
    """
    N, input_dim = x.shape
    tm, n_pad = _choose_tiles(N, tile_rows)

    # Feature-major, zero-padded, bf16 input: (input_dim, N_pad).
    xt = jnp.zeros((input_dim, n_pad), operand_dtype).at[:, :N].set(
        x.T.astype(operand_dtype))

    out = _ranknet_pallas(xt, _prep_params(params, operand_dtype), tm)
    return out[0, :N].reshape(N, 1)


def _pick_tile_dividing(n_fm, tile_rows, min_tiles_large=4):
    """Largest tm (multiple of 128, ~<= tile_rows) that divides n_fm exactly,
    aiming for >= min_tiles_large steps when n_fm is large."""
    assert n_fm % 128 == 0 and tile_rows % 128 == 0
    units = n_fm // 128
    n_tiles = max(_cdiv(n_fm, tile_rows), 1)
    if units >= min_tiles_large:
        n_tiles = max(n_tiles, min_tiles_large)
    cap = max(_cdiv(units, n_tiles), 1)
    for d in range(cap, 0, -1):
        if units % d == 0:
            return 128 * d
    return 128


def ranknet_forward_feature_major(xt, params, *, tile_rows=8192):
    """Fast path: xt is caller-produced feature-major (input_dim, N_fm) input
    (bf16 preferred), N_fm % 128 == 0 (caller pads).  No wrapper-side HBM pass.
    Returns (N_fm,) f32 scores; caller slices off its own padding."""
    input_dim, n_fm = xt.shape
    assert n_fm % 128 == 0, "feature-major input must be padded to a multiple of 128 docs"
    tm = _pick_tile_dividing(n_fm, tile_rows)
    xt = xt.astype(jnp.bfloat16)   # no-op if the caller already supplies bf16
    out = _ranknet_pallas(xt, _prep_params(params, jnp.bfloat16), tm)
    return out[0]


# ---------------------------------------------------------------------------
# Init + references
# ---------------------------------------------------------------------------
def init_params(key, input_dim, h_dim):
    """torch nn.Linear default init: U(+/-1/sqrt(fan_in)); W is (out,in), b (out,)."""
    keys = jax.random.split(key, 6)
    fan_in = [input_dim, h_dim[0], h_dim[1]]
    fan_out = [h_dim[0], h_dim[1], 1]
    params = []
    for i in range(3):
        bound = 1.0 / (fan_in[i] ** 0.5)
        w = jax.random.uniform(keys[2 * i], (fan_out[i], fan_in[i]),
                               minval=-bound, maxval=bound, dtype=jnp.float32)
        b = jax.random.uniform(keys[2 * i + 1], (fan_out[i],),
                               minval=-bound, maxval=bound, dtype=jnp.float32)
        params += [w, b]
    return tuple(params)


def ranknet_ref_f32(x, params):
    """Plain-JAX f32 reference (exact module semantics, eval-mode dropout)."""
    w1, b1, w2, b2, wl, bl = params
    h = jnp.maximum(x @ w1.T + b1, 0.0)
    h = jnp.maximum(h @ w2.T + b2, 0.0)
    return h @ wl.T + bl


def ranknet_ref_mixed(x, params, operand_dtype=jnp.bfloat16):
    """Reference mirroring the kernel arithmetic: bf16-operand/f32-accumulate
    hidden layers, f32 scoring head."""
    w1, b1, w2, b2, wl, bl = params

    def lin_mxu(h, w, b):
        return (jnp.dot(h.astype(operand_dtype), w.T.astype(operand_dtype),
                        preferred_element_type=jnp.float32) + b)

    h = jnp.maximum(lin_mxu(x, w1, b1), 0.0)
    h = jnp.maximum(lin_mxu(h, w2, b2), 0.0)
    return h @ wl.T + bl           # head in f32 (matches in-kernel VPU head)


# ---------------------------------------------------------------------------
# Test
# ---------------------------------------------------------------------------
if __name__ == "__main__":
    # Shapes consistent with RankNet(trial, num_layer=2, input_dim=32,
    # h_dim=[32, 32], lr_rate=0.1).
    INPUT_DIM = 32
    H_DIM = [32, 32]

    key = jax.random.PRNGKey(0)
    kx, kx2, kx3, kp = jax.random.split(key, 4)
    params = init_params(kp, INPUT_DIM, H_DIM)

    fwd = jax.jit(ranknet_forward, static_argnames=("tile_rows", "operand_dtype"))
    fwd_fm = jax.jit(ranknet_forward_feature_major, static_argnames=("tile_rows",))

    # --- small ranking batch (single 128-lane tile, grid=(1,)) ---
    N = 8
    x = jax.random.normal(kx, (N, INPUT_DIM), dtype=jnp.float32)
    out = jax.block_until_ready(fwd(x, params))
    assert out.shape == (N, 1), out.shape
    ref_mix = ranknet_ref_mixed(x, params)
    ref_f32 = ranknet_ref_f32(x, params)
    assert jnp.allclose(out, ref_mix, atol=5e-3, rtol=5e-3), (
        f"mixed-precision mismatch: {jnp.max(jnp.abs(out - ref_mix))}")
    assert jnp.allclose(out, ref_f32, atol=5e-2, rtol=5e-2), (
        f"f32 mismatch: {jnp.max(jnp.abs(out - ref_f32))}")

    # --- multi-tile path with tail padding (tile_rows=128 -> grid=(3,)) ---
    N2 = 300
    x2 = jax.random.normal(kx2, (N2, INPUT_DIM), dtype=jnp.float32)
    out2 = jax.block_until_ready(fwd(x2, params, tile_rows=128))
    assert out2.shape == (N2, 1), out2.shape
    ref2_mix = ranknet_ref_mixed(x2, params)
    ref2_f32 = ranknet_ref_f32(x2, params)
    assert jnp.allclose(out2, ref2_mix, atol=5e-3, rtol=5e-3), (
        f"mixed-precision mismatch (tiled): {jnp.max(jnp.abs(out2 - ref2_mix))}")
    assert jnp.allclose(out2, ref2_f32, atol=5e-2, rtol=5e-2), (
        f"f32 mismatch (tiled): {jnp.max(jnp.abs(out2 - ref2_f32))}")

    # --- feature-major fast path (caller-produced bf16 layout, no wrapper pass) ---
    n_fm = _round_up(N2, 128)
    xt_fm = jnp.zeros((INPUT_DIM, n_fm), jnp.bfloat16).at[:, :N2].set(
        x2.T.astype(jnp.bfloat16))
    out_fm = jax.block_until_ready(fwd_fm(xt_fm, params, tile_rows=128))
    assert out_fm.shape == (n_fm,), out_fm.shape
    assert jnp.allclose(out_fm[:N2].reshape(N2, 1), ref2_mix, atol=5e-3, rtol=5e-3), (
        f"feature-major mismatch: {jnp.max(jnp.abs(out_fm[:N2].reshape(N2,1) - ref2_mix))}")

    # --- balanced-tile / min-4-steps path (default tile_rows=8192, N=2500 ->
    #     tm=640, grid=(4,)): exercises the v7x two-core sizing logic ---
    N3 = 2500
    x3 = jax.random.normal(kx3, (N3, INPUT_DIM), dtype=jnp.float32)
    out3 = jax.block_until_ready(fwd(x3, params))
    assert out3.shape == (N3, 1), out3.shape
    ref3_mix = ranknet_ref_mixed(x3, params)
    assert jnp.allclose(out3, ref3_mix, atol=5e-3, rtol=5e-3), (
        f"mixed-precision mismatch (balanced tiles): {jnp.max(jnp.abs(out3 - ref3_mix))}")

    print("KERNEL_OK")
</pallas_src>

<mosaic_0001>
module attributes {stable_mosaic.version = 11 : i64} {
  func.func @ranknet_kernel(%arg0: i32, %arg1: memref<32x128xbf16, #tpu.memory_space<vmem>>, %arg2: memref<32x32xbf16, #tpu.memory_space<vmem>>, %arg3: memref<32x1xf32, #tpu.memory_space<vmem>>, %arg4: memref<32x32xbf16, #tpu.memory_space<vmem>>, %arg5: memref<32x1xf32, #tpu.memory_space<vmem>>, %arg6: memref<32x1xf32, #tpu.memory_space<vmem>>, %arg7: memref<1x1xf32, #tpu.memory_space<vmem>>, %arg8: memref<1x128xf32, #tpu.memory_space<vmem>>) attributes {dimension_semantics = [#tpu.dimension_semantics<parallel>], iteration_bounds = array<i64: 1>, scalar_prefetch = 0 : i64, scratch_operands = 0 : i64, tpu.core_type = #tpu.core_type<tc>, window_params = [{transform_indices = @transform_0, window_bounds = array<i64: 32, 128>}, {pipeline_mode = #tpu.pipeline_mode<synchronous>, transform_indices = @transform_1, window_bounds = array<i64: 32, 32>}, {pipeline_mode = #tpu.pipeline_mode<synchronous>, transform_indices = @transform_2, window_bounds = array<i64: 32, 1>}, {pipeline_mode = #tpu.pipeline_mode<synchronous>, transform_indices = @transform_3, window_bounds = array<i64: 32, 32>}, {pipeline_mode = #tpu.pipeline_mode<synchronous>, transform_indices = @transform_4, window_bounds = array<i64: 32, 1>}, {pipeline_mode = #tpu.pipeline_mode<synchronous>, transform_indices = @transform_5, window_bounds = array<i64: 32, 1>}, {pipeline_mode = #tpu.pipeline_mode<synchronous>, transform_indices = @transform_6, window_bounds = array<i64: 1, 1>}, {transform_indices = @transform_7, window_bounds = array<i64: 1, 128>}]} {
    %c0 = arith.constant 0 : index
    %c0_0 = arith.constant 0 : index
    %0 = vector.load %arg1[%c0, %c0_0] : memref<32x128xbf16, #tpu.memory_space<vmem>>, vector<32x128xbf16>
    %c0_1 = arith.constant 0 : index
    %c0_2 = arith.constant 0 : index
    %1 = vector.load %arg2[%c0_1, %c0_2] : memref<32x32xbf16, #tpu.memory_space<vmem>>, vector<32x32xbf16>
    %cst = arith.constant dense<0.000000e+00> : vector<32x128xf32>
    %2 = tpu.matmul %1, %0, %cst {dimension_numbers = #tpu.dot_dimension_numbers<[1], [0], [0], [1], [0, 0, 1, 1], [], []>} : vector<32x32xbf16>, vector<32x128xbf16>, vector<32x128xf32> -> vector<32x128xf32>
    %c0_3 = arith.constant 0 : index
    %c0_4 = arith.constant 0 : index
    %3 = vector.load %arg3[%c0_3, %c0_4] : memref<32x1xf32, #tpu.memory_space<vmem>>, vector<32x1xf32>
    %4 = vector.broadcast %3 : vector<32x1xf32> to vector<32x128xf32>
    %5 = arith.addf %2, %4 : vector<32x128xf32>
    %cst_5 = arith.constant 0.000000e+00 : f32
    %6 = vector.broadcast %cst_5 : f32 to vector<32x128xf32>
    %7 = arith.maximumf %5, %6 : vector<32x128xf32>
    %c0_6 = arith.constant 0 : index
    %c0_7 = arith.constant 0 : index
    %8 = vector.load %arg4[%c0_6, %c0_7] : memref<32x32xbf16, #tpu.memory_space<vmem>>, vector<32x32xbf16>
    %9 = arith.truncf %7 : vector<32x128xf32> to vector<32x128xbf16>
    %cst_8 = arith.constant dense<0.000000e+00> : vector<32x128xf32>
    %10 = tpu.matmul %8, %9, %cst_8 {dimension_numbers = #tpu.dot_dimension_numbers<[1], [0], [0], [1], [0, 0, 1, 1], [], []>} : vector<32x32xbf16>, vector<32x128xbf16>, vector<32x128xf32> -> vector<32x128xf32>
    %c0_9 = arith.constant 0 : index
    %c0_10 = arith.constant 0 : index
    %11 = vector.load %arg5[%c0_9, %c0_10] : memref<32x1xf32, #tpu.memory_space<vmem>>, vector<32x1xf32>
    %12 = vector.broadcast %11 : vector<32x1xf32> to vector<32x128xf32>
    %13 = arith.addf %10, %12 : vector<32x128xf32>
    %cst_11 = arith.constant 0.000000e+00 : f32
    %14 = vector.broadcast %cst_11 : f32 to vector<32x128xf32>
    %15 = arith.maximumf %13, %14 : vector<32x128xf32>
    %c0_12 = arith.constant 0 : index
    %c0_13 = arith.constant 0 : index
    %16 = vector.load %arg6[%c0_12, %c0_13] : memref<32x1xf32, #tpu.memory_space<vmem>>, vector<32x1xf32>
    %17 = vector.broadcast %16 : vector<32x1xf32> to vector<32x128xf32>
    %18 = arith.mulf %17, %15 : vector<32x128xf32>
    %cst_14 = arith.constant dense<0.000000e+00> : vector<128xf32>
    %19 = vector.multi_reduction <add>, %18, %cst_14 [0] : vector<32x128xf32> to vector<128xf32>
    %20 = vector.shape_cast %19 : vector<128xf32> to vector<1x128xf32>
    %c0_15 = arith.constant 0 : index
    %c0_16 = arith.constant 0 : index
    %21 = vector.load %arg7[%c0_15, %c0_16] : memref<1x1xf32, #tpu.memory_space<vmem>>, vector<1x1xf32>
    %22 = vector.broadcast %21 : vector<1x1xf32> to vector<1x128xf32>
    %23 = arith.addf %20, %22 : vector<1x128xf32>
    %c0_17 = arith.constant 0 : index
    %c0_18 = arith.constant 0 : index
    %24 = vector.load %arg8[%c0_17, %c0_18] : memref<1x128xf32, #tpu.memory_space<vmem>>, vector<1x128xf32>
    tpu.vector_store %arg8[%c0_17, %c0_18], %23 {strides = array<i32>} : memref<1x128xf32, #tpu.memory_space<vmem>>, vector<1x128xf32>,
    return
  }
  func.func @transform_0(%arg0: i32) -> (i32, i32) {
    %c0_i32 = arith.constant 0 : i32
    %c0_i32_0 = arith.constant 0 : i32
    return %c0_i32, %arg0 : i32, i32
  }
  func.func @transform_1(%arg0: i32) -> (i32, i32) {
    %c0_i32 = arith.constant 0 : i32
    %c0_i32_0 = arith.constant 0 : i32
    %c0_i32_1 = arith.constant 0 : i32
    return %c0_i32, %c0_i32_0 : i32, i32
  }
  func.func @transform_2(%arg0: i32) -> (i32, i32) {
    %c0_i32 = arith.constant 0 : i32
    %c0_i32_0 = arith.constant 0 : i32
    %c0_i32_1 = arith.constant 0 : i32
    return %c0_i32, %c0_i32_0 : i32, i32
  }
  func.func @transform_3(%arg0: i32) -> (i32, i32) {
    %c0_i32 = arith.constant 0 : i32
    %c0_i32_0 = arith.constant 0 : i32
    %c0_i32_1 = arith.constant 0 : i32
    return %c0_i32, %c0_i32_0 : i32, i32
  }
  func.func @transform_4(%arg0: i32) -> (i32, i32) {
    %c0_i32 = arith.constant 0 : i32
    %c0_i32_0 = arith.constant 0 : i32
    %c0_i32_1 = arith.constant 0 : i32
    return %c0_i32, %c0_i32_0 : i32, i32
  }
  func.func @transform_5(%arg0: i32) -> (i32, i32) {
    %c0_i32 = arith.constant 0 : i32
    %c0_i32_0 = arith.constant 0 : i32
    %c0_i32_1 = arith.constant 0 : i32
    return %c0_i32, %c0_i32_0 : i32, i32
  }
  func.func @transform_6(%arg0: i32) -> (i32, i32) {
    %c0_i32 = arith.constant 0 : i32
    %c0_i32_0 = arith.constant 0 : i32
    %c0_i32_1 = arith.constant 0 : i32
    return %c0_i32, %c0_i32_0 : i32, i32
  }
  func.func @transform_7(%arg0: i32) -> (i32, i32) {
    %c0_i32 = arith.constant 0 : i32
    %c0_i32_0 = arith.constant 0 : i32
    return %c0_i32, %arg0 : i32, i32
  }
}

</mosaic_0001>

<bundles_post_ra>
// kernel: ranknet_forward.1
= control target key start
LH: loop header
LB: loop body
LE: loop exit
PB: predicated region body
PF: predicated region fallthrough
CT: control target
= control target key end

     0   :  { %v338_v1 = vmov 0   ;;  %vm83_vm0 = vcmask 261120   ;;  %s443_s0 = inlined_call_operand.vmem [shape: bf16[32,128], index: 0, kind: input, shape index: {}]   ;;  %s444_s1 = inlined_call_operand.vmem [shape: bf16[32,32], index: 1, kind: input, shape index: {}]   ;;  %s445_s6 = inlined_call_operand.<no memory space> [shape: f32[1,1], index: 6, kind: input, shape index: {}]   ;;  %s446_s2 = inlined_call_operand.vmem [shape: f32[32,1], index: 2, kind: input, shape index: {}]   ;;  %s447_s4 = inlined_call_operand.vmem [shape: f32[32,1], index: 4, kind: input, shape index: {}]   ;;  %s448_s5 = inlined_call_operand.vmem [shape: f32[32,1], index: 5, kind: input, shape index: {}]   ;;  %s449_s3 = inlined_call_operand.vmem [shape: bf16[32,32], index: 3, kind: input, shape index: {}]   ;;  %s450_s7 = inlined_call_operand.vmem [shape: f32[1,128], index: 7, kind: output, shape index: {}]  }
   0x1   :  { %v332_v0 = vld [vmem:[%s443_s0 + $0x8] sm:$0xff]   ;;  %330 = vset.pattern.permute.xlu0 %v338_v1  ;;  %331 = vset.pattern.permute.xlu1 %v338_v1  ;;  %v12_v2 = vstv %s445_s6  ;;  %v333_v3 = vld [vmem:[%s443_s0] sm:$0xff]   ;;  %v39_v5 = vld [vmem:[%s446_s2 + $0x10] sm:$0xff]  ;;  %v285_v1 = vlaneseq }
   0x2   :  { %13 = vst [vmem:[#allocation2] sm:$0x1] %v12_v2  ;;  %313 = vmatprep.subr.bf16.mxu0 %v332_v0  ;;  %v334_v4 = vld [vmem:[%s444_s1] sm:$0xff]   ;;  %53 = vperm.xlu0 %330, %v39_v5   ;;  %v335_v7 = vld [vmem:[%s444_s1 + $0x8] sm:$0xff]   ;;  %v40_v8 = vld [vmem:[%s446_s2 + $0x18] sm:$0xff] }
   0x3   :  { %314 = vmatpush3.bf16.msra.mxu0 %v332_v0  ;;  %317 = vmatprep.mubr.msk.bf16.mxu0 %vm83_vm0, %v334_v4  ;;  %v37_v6 = vld [vmem:[%s446_s2] sm:$0xff]  ;;  %v38_v9 = vld [vmem:[%s446_s2 + $0x8] sm:$0xff]  ;;  %v151_v12 = vld [vmem:[%s447_s4 + $0x10] sm:$0xff]  ;;  %v286_v4 = vshrl.u32 %v285_v1, 7 }
   0x4   :  { %315 = vmatprep.subr.bf16.mxu0 %v333_v3  ;;  %43 = vperm.xlu1 %331, %v37_v6   ;;  %v149_v10 = vld [vmem:[%s447_s4] sm:$0xff]  ;;  %v150_v11 = vld [vmem:[%s447_s4 + $0x8] sm:$0xff]  ;;  %v152_v13 = vld [vmem:[%s447_s4 + $0x18] sm:$0xff] }
   0x5   :  { %v242_v14 = vld [vmem:[%s448_s5] sm:$0xff]  ;;  %v243_v15 = vld [vmem:[%s448_s5 + $0x8] sm:$0xff]  ;;  %v244_v16 = vld [vmem:[%s448_s5 + $0x10] sm:$0xff] }
   0x6   :  { %58 = vperm.xlu0 %330, %v40_v8   ;;  %v245_v17 = vld [vmem:[%s448_s5 + $0x18] sm:$0xff]  ;;  %v336_v19 = vld [vmem:[%s449_s3] sm:$0xff]   ;;  %v337_v38 = vld [vmem:[%s449_s3 + $0x8] sm:$0xff]  }
   0x7   :  { %316 = vmatpush3.bf16.msra.mxu0 %v333_v3  ;;  %325 = vmatprep.mubr.msk.bf16.mxu1 %vm83_vm0, %v336_v19 }
   0x8   :  { %48 = vperm.xlu1 %331, %v38_v9  }
   0x9   :  { %v279_v18 = vld [vmem:[#allocation2] sm:$0x1] }
   0xa   :  { %318 = vmatmul.mubr.msk.bf16.vlgmr.msra.gmra.mxu0 %vm83_vm0, %v335_v7  ;;  %155 = vperm.xlu0 %330, %v149_v10   ;;  %v287_v7 = vsub.s32 0, %v286_v4 }
   0xc   :  { %160 = vperm.xlu1 %331, %v150_v11  }
   0xe   :  { %165 = vperm.xlu0 %330, %v151_v12  }
  0x10   :  { %170 = vperm.xlu1 %331, %v152_v13  }
  0x12   :  { %248 = vperm.xlu0 %330, %v242_v14  }
  0x14   :  { %253 = vperm.xlu1 %331, %v243_v15  }
  0x16   :  { %258 = vperm.xlu0 %330, %v244_v16  }
  0x18   :  { %263 = vperm.xlu1 %331, %v245_v17  }
  0x1a   :  { %282 = vperm.xlu0 %330, %v279_v18  }
  0x7d   :  { %v54_v20 = vpop.permute.xlu0 %53 }
  0x7f   :  { %v44_v21 = vpop.permute.xlu1 %43 }
  0x81   :  { %v59_v25 = vpop.permute.xlu0 %58 }
  0x83   :  { %v49_v29 = vpop.permute.xlu1 %48 }
  0x85   :  { %v156_v39 = vpop.permute.xlu0 %155 }
  0x87   :  { %v161_v40 = vpop.permute.xlu1 %160 }
  0x89   :  { %v166_v41 = vpop.permute.xlu0 %165 }
  0x8b   :  { %v171_v43 = vpop.permute.xlu1 %170 }
  0x8d   :  { %v249_v48 = vpop.permute.xlu0 %248 }
  0x8f   :  { %v254_v53 = vpop.permute.xlu1 %253 }
  0x91   :  { %v259_v59 = vpop.permute.xlu0 %258 }
  0x93   :  { %v264_v62 = vpop.permute.xlu1 %263 }
  0x95   :  { %v283_v9 = vpop.permute.xlu0 %282 }
  0x96   :  { %v288_v11 = vrot.slane %v283_v9, %v287_v7 }
  0xca   :  { %v319_v22 = vpop.f32.mrf.mxu0 }
  0xcb   :  { %v133_v24 = vadd.f32 %v319_v22, %v54_v20 }
  0xcc   :  { %v124_v23 = vpop.f32.mrf.mxu0 }
  0xcd   :  { %v125_v27 = vadd.f32 %v124_v23, %v44_v21  ;;  %v141_v31 = vmax.f32 %v133_v24, 0.0 }
  0xce   :  { %v320_v26 = vpop.f32.mrf.mxu0 }
  0xcf   :  { %v136_v28 = vadd.f32 %v320_v26, %v59_v25  ;;  %v139_v34 = vmax.f32 %v125_v27, 0.0 }
  0xd0   :  { %v127_v30 = vpop.f32.mrf.mxu0 }
  0xd1   :  { %v142_v32 = vmax.f32 %v136_v28, 0.0  ;;  %v128_v33 = vadd.f32 %v127_v30, %v49_v29 }
  0xd3   :  { %v140_v35 = vmax.f32 %v128_v33, 0.0  ;;  %v148_v36 = vpack.c.bf16 %v142_v32, %v141_v31 }
  0xd5   :  { %v147_v37 = vpack.c.bf16 %v140_v35, %v139_v34  ;;  %321 = vmatprep.subr.bf16.mxu1 %v148_v36 }
  0xd6   :  { %322 = vmatpush3.bf16.msra.mxu1 %v148_v36 }
  0xd7   :  { %323 = vmatprep.subr.bf16.mxu1 %v147_v37 }
  0xda   :  { %324 = vmatpush3.bf16.msra.mxu1 %v147_v37 }
  0xdd   :  { %326 = vmatmul.mubr.msk.bf16.vlgmr.msra.gmra.mxu1 %vm83_vm0, %v337_v38 }
 0x19d   :  { %v327_v42 = vpop.f32.mrf.mxu1 }
 0x19e   :  { %v232_v47 = vadd.f32 %v327_v42, %v166_v41 }
 0x19f   :  { %v223_v44 = vpop.f32.mrf.mxu1 }
 0x1a0   :  { %v224_v45 = vadd.f32 %v223_v44, %v156_v39  ;;  %v240_v54 = vmax.f32 %v232_v47, 0.0 }
 0x1a1   :  { %v328_v46 = vpop.f32.mrf.mxu1 }
 0x1a2   :  { %v238_v50 = vmax.f32 %v224_v45, 0.0  ;;  %v235_v51 = vadd.f32 %v328_v46, %v171_v43  ;;  %v268_v60 = vmul.f32 %v259_v59, %v240_v54 }
 0x1a3   :  { %v226_v49 = vpop.f32.mrf.mxu1 }
 0x1a4   :  { %v227_v52 = vadd.f32 %v226_v49, %v161_v40  ;;  %v266_v56 = vmul.f32 %v249_v48, %v238_v50  ;;  %v241_v57 = vmax.f32 %v235_v51, 0.0 }
 0x1a6   :  { %v239_v55 = vmax.f32 %v227_v52, 0.0  ;;  %v269_v63 = vmul.f32 %v264_v62, %v241_v57 }
 0x1a8   :  { %v267_v58 = vmul.f32 %v254_v53, %v239_v55 }
 0x1aa   :  { %v270_v61 = vadd.f32 %v267_v58, %v266_v56 }
 0x1ac   :  { %v271_v0 = vadd.f32 %v270_v61, %v268_v60 }
 0x1ae   :  { %v272_v2 = vadd.f32 %v271_v0, %v269_v63 }
 0x1b0   :  { %v273_v3 = vrot.slane %v272_v2, 4 }
 0x1b2   :  { %v274_v5 = vadd.f32 %v273_v3, %v272_v2 }
 0x1b4   :  { %v275_v6 = vrot.slane %v274_v5, 2 }
 0x1b6   :  { %v276_v8 = vadd.f32 %v275_v6, %v274_v5 }
 0x1b8   :  { %v277_v10 = vrot.slane %v276_v8, 1 }
 0x1ba   :  { %v278_v12 = vadd.f32 %v277_v10, %v276_v8 }
 0x1bc   :  { %v289_v13 = vadd.f32 %v288_v11, %v278_v12 }
 0x1be   :  { %290 = vst [vmem:[%s450_s7] sm:$0x1] %v289_v13 }

</bundles_post_ra>
